<compile_context>
chip_gen: v7x
topology: tpu7x:2x2x1
jax: 0.10.0
libtpu: 0.0.40
codegen_flags: <defaults>
</compile_context>

<pallas_src>
import math

import jax
import jax.numpy as jnp
from jax.experimental import pallas as pl
from jax.experimental.pallas import tpu as pltpu

_LANE = 128


def _noise_injection_kernel(w_ref, x_ref, n_ref, o_ref):
    # w_ref: (1,) f32 in SMEM; x_ref/n_ref/o_ref: (block_rows, 128) tiles in VMEM.
    o_ref[...] = (x_ref[...] + w_ref[0] * n_ref[...]).astype(o_ref.dtype)


def _noise_injection_rng_kernel(seed_ref, w_ref, x_ref, o_ref):
    # out = x + w * N(0,1) drawn in-kernel (Box-Muller over the TPU hardware PRNG).
    # Stream separation across grid blocks / TensorCores: mix the block id with a
    # large odd constant before seeding (plain seed + pid can correlate).
    pltpu.prng_seed(
        seed_ref[0] + pl.program_id(0) * jnp.int32(2654435) + jnp.int32(1)
    )

    rows = x_ref.shape[0]
    hr = (rows + 1) // 2                      # half the tile per Box-Muller branch
    bits_shape = (hr, _LANE)
    exp_one = jnp.uint32(0x3F800000)

    b1 = pltpu.bitcast(pltpu.prng_random_bits(bits_shape), jnp.uint32)
    b2 = pltpu.bitcast(pltpu.prng_random_bits(bits_shape), jnp.uint32)
    # Exponent bit-trick: top 23 random bits become the mantissa of a [1, 2) float.
    v1 = pltpu.bitcast((b1 >> 9) | exp_one, jnp.float32)
    v2 = pltpu.bitcast((b2 >> 9) | exp_one, jnp.float32)
    u1 = jnp.float32(2.0) - v1                # (0, 1]  -> log() is finite
    u2 = v2 - jnp.float32(1.0)                # [0, 1)

    r = jnp.sqrt(jnp.float32(-2.0) * jnp.log(u1))        # EUP slot
    theta = jnp.float32(2.0 * math.pi) * u2
    # Use both Box-Muller outputs: two independent N(0,1) halves stacked on sublanes.
    z = jnp.concatenate([r * jnp.cos(theta), r * jnp.sin(theta)], axis=0)
    if 2 * hr != rows:                        # only for tiny odd full-array blocks
        z = z[:rows]

    o_ref[...] = (x_ref[...] + w_ref[0] * z).astype(o_ref.dtype)


def _round_up(n, m):
    return ((n + m - 1) // m) * m


def _sublane_multiple(dtype):
    # Packed-sublane minimum: 8 rows for 4-byte, 16 for 2-byte, 32 for 1-byte dtypes.
    return 8 * max(1, 4 // jnp.dtype(dtype).itemsize)


def noise_injection(x, weight, noise=None, seed=0, *, block_rows=4096):
    """out = x + weight * noise.  If noise is None, N(0,1) noise is injected
    (drawn in-kernel by the TPU hardware PRNG on a TPU backend)."""
    orig_shape = x.shape
    total = x.size
    w = jnp.asarray(weight, dtype=jnp.float32).reshape(1)

    use_inkernel_rng = (noise is None) and (jax.default_backend() == "tpu")
    if noise is None and not use_inkernel_rng:
        # pltpu.prng_* does not lower off-TPU; draw the noise with the standard JAX
        # PRNG and reuse the explicit-noise kernel.
        noise = jax.random.normal(jax.random.PRNGKey(seed), orig_shape, dtype=jnp.float32)

    # Lane-dense (rows, 128) slab.  Common case (total % 128 == 0): free reshapes
    # only -- no pad, no output slice.
    ragged = total % _LANE != 0
    n_rows = pl.cdiv(total, _LANE)
    noise2d = None
    if ragged:
        # TODO(synk): handle the <128-element tail with a tiny side computation
        # instead of a whole-array pad (rare for (B, H, W) image tensors).
        pad = n_rows * _LANE - total
        x2d = jnp.pad(x.reshape(-1), (0, pad)).reshape(n_rows, _LANE)
        if noise is not None:
            noise2d = jnp.pad(noise.reshape(-1), (0, pad)).reshape(n_rows, _LANE)
    else:
        x2d = x.reshape(n_rows, _LANE)
        if noise is not None:
            noise2d = noise.reshape(n_rows, _LANE)

    # Tile size: dtype-aware sublane multiple; <= ~rows/2 so the "parallel" axis has
    # >=2 blocks for megacore / v7x's two TensorCores; capped so the double-buffered
    # streams stay inside every generation's default scoped-VMEM limit (v5e 16 MiB).
    mult = _sublane_multiple(x.dtype)
    n_streams = 2 if use_inkernel_rng else 3
    vmem_cap_rows = (12 << 20) // (n_streams * 2 * _LANE * 4)
    br = min(int(block_rows), vmem_cap_rows, _round_up(pl.cdiv(n_rows, 2), mult))
    br = max(mult, (br // mult) * mult)
    if br >= n_rows:
        br = n_rows            # single full-array block (equal-to-array dims is legal)
    grid = (pl.cdiv(n_rows, br),)

    blk = pl.BlockSpec((br, _LANE), lambda i: (i, 0))
    smem = pl.BlockSpec(memory_space=pltpu.MemorySpace.SMEM)
    out_shape = jax.ShapeDtypeStruct((n_rows, _LANE), x.dtype)
    cparams = pltpu.CompilerParams(dimension_semantics=("parallel",))

    if use_inkernel_rng:
        seed_arr = jnp.asarray([seed], dtype=jnp.int32)
        out2d = pl.pallas_call(
            _noise_injection_rng_kernel,
            out_shape=out_shape,
            grid=grid,
            in_specs=[smem, smem, blk],
            out_specs=blk,
            compiler_params=cparams,
        )(seed_arr, w, x2d)
    else:
        out2d = pl.pallas_call(
            _noise_injection_kernel,
            out_shape=out_shape,
            grid=grid,
            in_specs=[smem, blk, blk],
            out_specs=blk,
            compiler_params=cparams,
        )(w, x2d, noise2d)

    if ragged:
        return out2d.reshape(-1)[:total].reshape(orig_shape)
    return out2d.reshape(orig_shape)


if __name__ == "__main__":
    # Small shapes consistent with forward(x) where x is (batch, height, width).
    B, H, W = 2, 16, 16
    key = jax.random.PRNGKey(0)
    kx, kn = jax.random.split(key)
    x = jax.random.normal(kx, (B, H, W), dtype=jnp.float32)

    # --- Path 1: explicit noise argument, nonzero weight (exercises the math). ---
    weight = jnp.array([0.7], dtype=jnp.float32)
    noise = jax.random.normal(kn, (B, H, W), dtype=jnp.float32)
    out = jax.block_until_ready(noise_injection(x, weight, noise=noise))
    ref = x + weight[0] * noise
    assert out.shape == x.shape
    assert jnp.allclose(out, ref, atol=1e-6, rtol=1e-6), "mismatch vs JAX reference"

    # --- Path 2: noise=None.  With the module's init (weight=0) output == x exactly. ---
    weight0 = jnp.zeros((1,), dtype=jnp.float32)
    out0 = jax.block_until_ready(noise_injection(x, weight0, seed=123))
    assert out0.shape == x.shape
    assert jnp.allclose(out0, x), "weight=0 path must return x unchanged"

    # --- Path 2b: noise=None, nonzero weight; sanity-check the injected noise. ---
    out_n = jax.block_until_ready(noise_injection(x, weight, seed=123))
    injected = (out_n - x) / weight[0]
    assert bool(jnp.all(jnp.isfinite(injected)))
    assert float(jnp.abs(jnp.mean(injected))) < 0.3       # ~6.8 sigma for 512 samples
    s = float(jnp.std(injected))
    assert 0.7 < s < 1.3

    # --- Path 3: larger input -> multi-block "parallel" grid, noise=None. ---
    x_big = jax.random.normal(kx, (2, 64, 64), dtype=jnp.float32)
    out_big = jax.block_until_ready(noise_injection(x_big, weight, seed=7))
    inj_big = (out_big - x_big) / weight[0]
    assert out_big.shape == x_big.shape
    assert bool(jnp.all(jnp.isfinite(inj_big)))
    assert float(jnp.abs(jnp.mean(inj_big))) < 0.1
    assert 0.85 < float(jnp.std(inj_big)) < 1.15

    # --- Path 4: ragged size (not a multiple of 128), explicit noise vs reference. ---
    x_r = jax.random.normal(kn, (3, 20, 20), dtype=jnp.float32)
    n_r = jax.random.normal(kx, (3, 20, 20), dtype=jnp.float32)
    out_r = jax.block_until_ready(noise_injection(x_r, weight, noise=n_r))
    ref_r = x_r + weight[0] * n_r
    assert out_r.shape == x_r.shape
    assert jnp.allclose(out_r, ref_r, atol=1e-6, rtol=1e-6), "ragged-tail mismatch"

    print("KERNEL_OK")
</pallas_src>

<mosaic_0001>
module attributes {stable_mosaic.version = 11 : i64} {
  func.func @_noise_injection_kernel(%arg0: i32, %arg1: memref<1xf32, #tpu.memory_space<smem>>, %arg2: memref<4x128xf32, #tpu.memory_space<vmem>>, %arg3: memref<4x128xf32, #tpu.memory_space<vmem>>, %arg4: memref<4x128xf32, #tpu.memory_space<vmem>>) attributes {dimension_semantics = [#tpu.dimension_semantics<parallel>], iteration_bounds = array<i64: 1>, scalar_prefetch = 0 : i64, scratch_operands = 0 : i64, tpu.core_type = #tpu.core_type<tc>, window_params = [{transform_indices = @transform_0, window_bounds = array<i64: 1>}, {transform_indices = @transform_1, window_bounds = array<i64: 4, 128>}, {transform_indices = @transform_2, window_bounds = array<i64: 4, 128>}, {transform_indices = @transform_3, window_bounds = array<i64: 4, 128>}]} {
    %c0 = arith.constant 0 : index
    %c0_0 = arith.constant 0 : index
    %0 = vector.load %arg2[%c0, %c0_0] : memref<4x128xf32, #tpu.memory_space<vmem>>, vector<4x128xf32>
    %c0_1 = arith.constant 0 : index
    %1 = memref.load %arg1[%c0_1] : memref<1xf32, #tpu.memory_space<smem>>
    %c0_2 = arith.constant 0 : index
    %c0_3 = arith.constant 0 : index
    %2 = vector.load %arg3[%c0_2, %c0_3] : memref<4x128xf32, #tpu.memory_space<vmem>>, vector<4x128xf32>
    %3 = vector.broadcast %1 : f32 to vector<4x128xf32>
    %4 = arith.mulf %3, %2 : vector<4x128xf32>
    %5 = arith.addf %0, %4 : vector<4x128xf32>
    %c0_4 = arith.constant 0 : index
    %c0_5 = arith.constant 0 : index
    %6 = vector.load %arg4[%c0_4, %c0_5] : memref<4x128xf32, #tpu.memory_space<vmem>>, vector<4x128xf32>
    tpu.vector_store %arg4[%c0_4, %c0_5], %5 {strides = array<i32>} : memref<4x128xf32, #tpu.memory_space<vmem>>, vector<4x128xf32>,
    return
  }
  func.func @transform_0(%arg0: i32) -> i32 {
    %c0_i32 = arith.constant 0 : i32
    %c0_i32_0 = arith.constant 0 : i32
    return %c0_i32 : i32
  }
  func.func @transform_1(%arg0: i32) -> (i32, i32) {
    %c0_i32 = arith.constant 0 : i32
    %c0_i32_0 = arith.constant 0 : i32
    return %arg0, %c0_i32 : i32, i32
  }
  func.func @transform_2(%arg0: i32) -> (i32, i32) {
    %c0_i32 = arith.constant 0 : i32
    %c0_i32_0 = arith.constant 0 : i32
    return %arg0, %c0_i32 : i32, i32
  }
  func.func @transform_3(%arg0: i32) -> (i32, i32) {
    %c0_i32 = arith.constant 0 : i32
    %c0_i32_0 = arith.constant 0 : i32
    return %arg0, %c0_i32 : i32, i32
  }
}

</mosaic_0001>

<bundles_post_ra>
// kernel: tpu_custom_call.1
= control target key start
LH: loop header
LB: loop body
LE: loop exit
PB: predicated region body
PF: predicated region fallthrough
CT: control target
= control target key end

     0   :  { %9 = vsyncpa [#allocation4], 0  ;;  %s152_s0 = inlined_call_operand.<no memory space> [shape: f32[1], index: 0, kind: input, shape index: {}]   ;;  %s153_s1 = inlined_call_operand.hbm [shape: f32[4,128], index: 1, kind: input, shape index: {}]   ;;  %s154_s2 = inlined_call_operand.vmem [shape: f32[4,128], index: 2, kind: input, shape index: {}]   ;;  %s155_s3 = inlined_call_operand.hbm [shape: f32[4,128], index: 3, kind: output, shape index: {}]  }
   0x1   :  { %10 = vsyncpa [#allocation5], 0  ;;  %s100_s12 = smov [#allocation3]   ;;  %s52_s16 = scalar_lea.hbm %s153_s1, 64 }
   0x2   :  { %s19_s13 = sshll.u32 %s100_s12, 4  ;;  %p53_p0 = scmp.ne.s32.totalorder %s153_s1, %s52_s16  ;;  %s20_s13 = int_to_ptr.vmem [resolvable:$true] %s19_s13 }
   0x3   :  { %p56_p1 = scmp.lt.u32.totalorder %s52_s16, %s153_s1 }
   0x5   :  { %p58_p2 = pnand %p56_p1, %p53_p0 }
   0x7   :  { %61 = shalt.err (!%p58_p2)
}
   0x8   :  { %s62_s21 = scalar_lea.vmem %s20_s13, 64  ;;  %p67_p4 = scmp.lt.s32.totalorder %s20_s13, %s20_s13 }
   0x9   :  { %p63_p3 = scmp.ne.s32.totalorder %s20_s13, %s62_s21  ;;  %p68_p5 = scmp.lt.s32.totalorder %s62_s21, %s62_s21 }
   0xb   :  { %p69_p6 = por %p68_p5, %p67_p4 }
   0xd   :  { %p70_p7 = pnand %p69_p6, %p63_p3 }
   0xf   :  { %73 = shalt.err (!%p70_p7)
}
  0x10   :  { %22 = dma.hbm_to_vmem [thread:$0]  %s153_s1, 64, %s20_s13, [#allocation4]  }
  0x11   :  { %96 = dma.done.wait [#allocation4], 64  }
  0x12   :  { %97 = vsyncadd [#allocation4], 4294967232  ;;  %v31_v0 = vstv %s152_s0  ;;  %v28_v1 = vld [vmem:[#allocation3] sm:$0xf]  ;;  %s101_s28 = smov [#allocation6]  }
  0x13   :  { %v30_v2 = vld [vmem:[%s154_s2] sm:$0xf]  ;;  %s41_s29 = sshll.u32 %s101_s28, 4  ;;  %s42_s29 = int_to_ptr.vmem [resolvable:$true] %s41_s29 }
  0x14   :  { %v32_v3 = vmul.f32 %v31_v0, %v30_v2  ;;  %s74_s30 = scalar_lea.vmem %s42_s29, 64  ;;  %p79_p9 = scmp.lt.s32.totalorder %s42_s29, %s42_s29 }
  0x15   :  { %p75_p8 = scmp.ne.s32.totalorder %s42_s29, %s74_s30  ;;  %p80_p10 = scmp.lt.s32.totalorder %s74_s30, %s74_s30 }
  0x16   :  { %v33_v4 = vadd.f32 %v32_v3, %v28_v1 }
  0x17   :  { %p81_p11 = por %p80_p10, %p79_p9 }
  0x18   :  { %34 = vst [vmem:[#allocation6] sm:$0xf] %v33_v4 }
  0x19   :  { %p82_p12 = pnand %p81_p11, %p75_p8 }
  0x1b   :  { %85 = shalt.err (!%p82_p12)
}
  0x1c   :  { %s86_s4 = scalar_lea.hbm %s155_s3, 64 }
  0x1d   :  { %p87_p13 = scmp.ne.s32.totalorder %s155_s3, %s86_s4  ;;  %p90_p0 = scmp.lt.u32.totalorder %s86_s4, %s155_s3 }
  0x1f   :  { %p92_p1 = pnand %p90_p0, %p87_p13 }
  0x21   :  { %95 = shalt.err (!%p92_p1)
}
  0x22   :  { %44 = dma.vmem_to_hbm [thread:$0]  %s42_s29, 64, %s155_s3, [#allocation5]  }
  0x23   :  { %98 = dma.done.wait [#allocation5], 64  }
  0x24   :  { %99 = vsyncadd [#allocation5], 4294967232 }
  0x25   :  { %48 = vsyncpa [#allocation4], 1 }
  0x26   :  { %49 = vsyncpa [#allocation5], 1 }

</bundles_post_ra>
